<compile_context>
chip_gen: v7x
topology: tpu7x:2x2x1
jax: 0.10.0
libtpu: 0.0.40
codegen_flags: <defaults>
</compile_context>

<pallas_src>
import jax
import jax.numpy as jnp
from jax import lax
from jax.experimental import pallas as pl
from jax.experimental.pallas import tpu as pltpu

_EPS = 1e-8


def _wcos_kernel(pred_ref, targ_ref, w_ref, sumerr_ref, nz_ref, se_acc, nz_acc):
    # pred_ref/targ_ref: (1, C, TS) VMEM tile; w_ref: (1, 1, TS)
    s = pl.program_id(1)

    @pl.when(s == 0)
    def _init():
        se_acc[...] = jnp.zeros_like(se_acc)
        nz_acc[...] = jnp.zeros_like(nz_acc)

    p = pred_ref[0].astype(jnp.float32)   # (C, TS)
    t = targ_ref[0].astype(jnp.float32)   # (C, TS)
    w = w_ref[0].astype(jnp.float32)      # (1, TS)

    # Channel (sublane) reductions on the XLU; elementwise products on the VPU.
    dot = jnp.sum(p * t, axis=0, keepdims=True)   # (1, TS)
    pn2 = jnp.sum(p * p, axis=0, keepdims=True)
    tn2 = jnp.sum(t * t, axis=0, keepdims=True)

    # cos = dot / max(|p|*|t|, eps)  ==  dot * rsqrt(max(|p|^2*|t|^2, eps^2))
    cos = dot * lax.rsqrt(jnp.maximum(pn2 * tn2, _EPS * _EPS))
    err = w * (1.0 - cos)

    # Scalar partial sums, accumulated across S tiles (lane-replicated scratch).
    se_acc[...] = se_acc[...] + jnp.sum(err)
    nz_acc[...] = nz_acc[...] + jnp.sum((w == 1.0).astype(jnp.float32))

    @pl.when(s == pl.num_programs(1) - 1)
    def _finalize():
        sumerr_ref[...] = se_acc[...].reshape(sumerr_ref.shape)
        nz_ref[...] = nz_acc[...].reshape(nz_ref.shape)


def _pick_spatial_tile(S, C, itemsize, dbuf_budget_bytes=12 * 1024 * 1024):
    """Largest multiple-of-128 divisor of S whose double-buffered input blocks
    (pred + target + weight) fit in `dbuf_budget_bytes`.  Falls back to the
    full extent S (always a legal block) if no such divisor exists."""
    if S % 128 != 0:
        return S
    bytes_per_lane_dbuf = (2 * C + 1) * itemsize * 2  # x2 for double buffering
    cap = max(128, dbuf_budget_bytes // bytes_per_lane_dbuf)
    ts = min(S, (cap // 128) * 128)
    while ts > 128 and S % ts != 0:
        ts -= 128
    if ts <= 0 or S % ts != 0:
        ts = S
    return ts


def weighted_cosine_loss(pred, target, weight):
    """pred/target: (B, C, D, H, W) f32 or bf16; weight: (B, 1, D, H, W) 0/1 mask."""
    B, C, D, H, W = pred.shape
    S = D * H * W
    p = pred.reshape(B, C, S)
    t = target.reshape(B, C, S)
    w = weight.reshape(B, 1, S)

    itemsize = max(jnp.dtype(p.dtype).itemsize,
                   jnp.dtype(t.dtype).itemsize,
                   jnp.dtype(w.dtype).itemsize)
    TS = _pick_spatial_tile(S, C, itemsize)
    n_s = S // TS

    out_slab = jax.ShapeDtypeStruct((B, 1, 128), jnp.float32)

    sum_err, nz = pl.pallas_call(
        _wcos_kernel,
        out_shape=(out_slab, out_slab),
        grid_spec=pltpu.PrefetchScalarGridSpec(
            num_scalar_prefetch=0,
            grid=(B, n_s),
            in_specs=[
                pl.BlockSpec((1, C, TS), lambda b, s: (b, 0, s)),
                pl.BlockSpec((1, C, TS), lambda b, s: (b, 0, s)),
                pl.BlockSpec((1, 1, TS), lambda b, s: (b, 0, s)),
            ],
            out_specs=[
                pl.BlockSpec((1, 1, 128), lambda b, s: (b, 0, 0)),
                pl.BlockSpec((1, 1, 128), lambda b, s: (b, 0, 0)),
            ],
            scratch_shapes=[
                pltpu.VMEM((1, 128), jnp.float32),  # sum_error accumulator
                pltpu.VMEM((1, 128), jnp.float32),  # non_zeros accumulator
            ],
        ),
        compiler_params=pltpu.CompilerParams(
            # Batch axis sharded across TensorCores; S axis is a sequential
            # reduction (output block resident across it).
            dimension_semantics=("parallel", "arbitrary"),
            # Safe on all generations: < 64 MiB physical VMEM on v7x, above the
            # 16/32 MiB default scoped limits on v5e/v6e; blocks budgeted ~12 MiB.
            vmem_limit_bytes=32 * 1024 * 1024,
        ),
    )(p, t, w)

    sum_err = sum_err[:, 0, 0]  # (B,)
    nz = nz[:, 0, 0]            # (B,)
    return jnp.mean(sum_err / nz)


def _reference(pred, target, weight):
    """Pure-JAX reference mirroring the PyTorch forward (f32)."""
    pred = pred.astype(jnp.float32)
    target = target.astype(jnp.float32)
    weight = weight.astype(jnp.float32)
    dot = jnp.sum(pred * target, axis=1)
    pn = jnp.sqrt(jnp.sum(pred * pred, axis=1))
    tn = jnp.sqrt(jnp.sum(target * target, axis=1))
    cos = dot / jnp.maximum(pn * tn, _EPS)               # (B, D, H, W)
    err = weight * (1.0 - cos[:, None])                  # (B, 1, D, H, W)
    sum_err = jnp.sum(err, axis=(1, 2, 3, 4))
    nz = jnp.sum((weight == 1.0), axis=(1, 2, 3, 4)).astype(jnp.float32)
    return jnp.mean(sum_err / nz)


if __name__ == "__main__":
    key = jax.random.PRNGKey(0)
    kp, kt, kw = jax.random.split(key, 3)

    B, C, D, H, W = 2, 4, 8, 8, 8   # S = 512 (multiple of 128)
    pred = jax.random.normal(kp, (B, C, D, H, W), dtype=jnp.float32)
    target = jax.random.normal(kt, (B, C, D, H, W), dtype=jnp.float32)
    weight = (jax.random.uniform(kw, (B, 1, D, H, W)) > 0.5).astype(jnp.float32)
    weight = weight.at[:, :, 0, 0, 0].set(1.0)  # guarantee non_zeros > 0 per batch

    # f32 path vs. pure-JAX reference.
    loss = jax.block_until_ready(weighted_cosine_loss(pred, target, weight))
    ref = jax.block_until_ready(_reference(pred, target, weight))
    assert jnp.allclose(loss, ref, rtol=1e-5, atol=1e-6), (loss, ref)

    # bf16 input path (halves HBM traffic; f32 accumulation inside the kernel).
    loss_bf = jax.block_until_ready(
        weighted_cosine_loss(pred.astype(jnp.bfloat16),
                             target.astype(jnp.bfloat16), weight))
    ref_bf = jax.block_until_ready(
        _reference(pred.astype(jnp.bfloat16), target.astype(jnp.bfloat16), weight))
    assert jnp.allclose(loss_bf, ref_bf, rtol=1e-3, atol=1e-4), (loss_bf, ref_bf)

    print("KERNEL_OK")
</pallas_src>

<mosaic_0001>
module attributes {stable_mosaic.version = 11 : i64} {
  func.func @_wcos_kernel(%arg0: i32, %arg1: i32, %arg2: memref<1x4x512xf32, #tpu.memory_space<vmem>>, %arg3: memref<1x4x512xf32, #tpu.memory_space<vmem>>, %arg4: memref<1x1x512xf32, #tpu.memory_space<vmem>>, %arg5: memref<1x1x128xf32, #tpu.memory_space<vmem>>, %arg6: memref<1x1x128xf32, #tpu.memory_space<vmem>>, %arg7: memref<1x128xf32, #tpu.memory_space<vmem>>, %arg8: memref<1x128xf32, #tpu.memory_space<vmem>>) attributes {dimension_semantics = [#tpu.dimension_semantics<parallel>, #tpu.dimension_semantics<arbitrary>], iteration_bounds = array<i64: 2, 1>, scalar_prefetch = 0 : i64, scratch_operands = 2 : i64, tpu.core_type = #tpu.core_type<tc>, window_params = [{transform_indices = @transform_0, window_bounds = array<i64: 1, 4, 512>}, {transform_indices = @transform_1, window_bounds = array<i64: 1, 4, 512>}, {transform_indices = @transform_2, window_bounds = array<i64: 1, 1, 512>}, {transform_indices = @transform_3, window_bounds = array<i64: 1, 1, 128>}, {transform_indices = @transform_4, window_bounds = array<i64: 1, 1, 128>}]} {
    %c0_i32 = arith.constant 0 : i32
    %0 = arith.cmpi eq, %arg1, %c0_i32 : i32
    %1 = arith.extui %0 : i1 to i32
    %c0_i32_0 = arith.constant 0 : i32
    %2 = arith.cmpi ne, %1, %c0_i32_0 : i32
    scf.if %2 {
      %cst_26 = arith.constant 0.000000e+00 : f32
      %49 = vector.broadcast %cst_26 : f32 to vector<1x128xf32>
      %c0_27 = arith.constant 0 : index
      %c0_28 = arith.constant 0 : index
      %50 = vector.load %arg7[%c0_27, %c0_28] : memref<1x128xf32, #tpu.memory_space<vmem>>, vector<1x128xf32>
      tpu.vector_store %arg7[%c0_27, %c0_28], %49 {strides = array<i32>} : memref<1x128xf32, #tpu.memory_space<vmem>>, vector<1x128xf32>,
      %cst_29 = arith.constant 0.000000e+00 : f32
      %51 = vector.broadcast %cst_29 : f32 to vector<1x128xf32>
      %c0_30 = arith.constant 0 : index
      %c0_31 = arith.constant 0 : index
      %52 = vector.load %arg8[%c0_30, %c0_31] : memref<1x128xf32, #tpu.memory_space<vmem>>, vector<1x128xf32>
      tpu.vector_store %arg8[%c0_30, %c0_31], %51 {strides = array<i32>} : memref<1x128xf32, #tpu.memory_space<vmem>>, vector<1x128xf32>,
    } else {
    }
    %c0 = arith.constant 0 : index
    %c0_1 = arith.constant 0 : index
    %c0_2 = arith.constant 0 : index
    %3 = vector.load %arg2[%c0, %c0_1, %c0_2] : memref<1x4x512xf32, #tpu.memory_space<vmem>>, vector<1x4x512xf32>
    %4 = vector.shape_cast %3 : vector<1x4x512xf32> to vector<4x512xf32>
    %c0_3 = arith.constant 0 : index
    %c0_4 = arith.constant 0 : index
    %c0_5 = arith.constant 0 : index
    %5 = vector.load %arg3[%c0_3, %c0_4, %c0_5] : memref<1x4x512xf32, #tpu.memory_space<vmem>>, vector<1x4x512xf32>
    %6 = vector.shape_cast %5 : vector<1x4x512xf32> to vector<4x512xf32>
    %c0_6 = arith.constant 0 : index
    %c0_7 = arith.constant 0 : index
    %c0_8 = arith.constant 0 : index
    %7 = vector.load %arg4[%c0_6, %c0_7, %c0_8] : memref<1x1x512xf32, #tpu.memory_space<vmem>>, vector<1x1x512xf32>
    %8 = vector.shape_cast %7 : vector<1x1x512xf32> to vector<1x512xf32>
    %9 = arith.mulf %4, %6 : vector<4x512xf32>
    %cst = arith.constant dense<0.000000e+00> : vector<512xf32>
    %10 = vector.multi_reduction <add>, %9, %cst [0] : vector<4x512xf32> to vector<512xf32>
    %11 = vector.shape_cast %10 : vector<512xf32> to vector<1x512xf32>
    %12 = arith.mulf %4, %4 : vector<4x512xf32>
    %cst_9 = arith.constant dense<0.000000e+00> : vector<512xf32>
    %13 = vector.multi_reduction <add>, %12, %cst_9 [0] : vector<4x512xf32> to vector<512xf32>
    %14 = vector.shape_cast %13 : vector<512xf32> to vector<1x512xf32>
    %15 = arith.mulf %6, %6 : vector<4x512xf32>
    %cst_10 = arith.constant dense<0.000000e+00> : vector<512xf32>
    %16 = vector.multi_reduction <add>, %15, %cst_10 [0] : vector<4x512xf32> to vector<512xf32>
    %17 = vector.shape_cast %16 : vector<512xf32> to vector<1x512xf32>
    %18 = arith.mulf %14, %17 : vector<1x512xf32>
    %cst_11 = arith.constant 1.000000e-16 : f32
    %19 = vector.broadcast %cst_11 : f32 to vector<1x512xf32>
    %20 = arith.maximumf %18, %19 : vector<1x512xf32>
    %21 = math.rsqrt %20 : vector<1x512xf32>
    %22 = arith.mulf %11, %21 : vector<1x512xf32>
    %cst_12 = arith.constant 1.000000e+00 : f32
    %23 = vector.broadcast %cst_12 : f32 to vector<1x512xf32>
    %24 = arith.subf %23, %22 : vector<1x512xf32>
    %25 = arith.mulf %8, %24 : vector<1x512xf32>
    %c0_13 = arith.constant 0 : index
    %c0_14 = arith.constant 0 : index
    %26 = vector.load %arg7[%c0_13, %c0_14] : memref<1x128xf32, #tpu.memory_space<vmem>>, vector<1x128xf32>
    %27 = vector.shape_cast %25 : vector<1x512xf32> to vector<1x1x512xf32>
    %cst_15 = arith.constant dense<0.000000e+00> : vector<1xf32>
    %28 = vector.multi_reduction <add>, %27, %cst_15 [1, 2] : vector<1x1x512xf32> to vector<1xf32>
    %29 = vector.shape_cast %28 : vector<1xf32> to vector<1x1x1xf32>
    %30 = vector.extract %29[0, 0, 0] : f32 from vector<1x1x1xf32>
    %31 = vector.broadcast %30 : f32 to vector<1x128xf32>
    %32 = arith.addf %26, %31 : vector<1x128xf32>
    %c0_16 = arith.constant 0 : index
    %c0_17 = arith.constant 0 : index
    %33 = vector.load %arg7[%c0_16, %c0_17] : memref<1x128xf32, #tpu.memory_space<vmem>>, vector<1x128xf32>
    tpu.vector_store %arg7[%c0_16, %c0_17], %32 {strides = array<i32>} : memref<1x128xf32, #tpu.memory_space<vmem>>, vector<1x128xf32>,
    %c0_18 = arith.constant 0 : index
    %c0_19 = arith.constant 0 : index
    %34 = vector.load %arg8[%c0_18, %c0_19] : memref<1x128xf32, #tpu.memory_space<vmem>>, vector<1x128xf32>
    %cst_20 = arith.constant 1.000000e+00 : f32
    %35 = vector.broadcast %cst_20 : f32 to vector<1x512xf32>
    %36 = arith.cmpf oeq, %8, %35 : vector<1x512xf32>
    %37 = arith.extui %36 : vector<1x512xi1> to vector<1x512xi32>
    %38 = arith.sitofp %37 : vector<1x512xi32> to vector<1x512xf32>
    %39 = vector.shape_cast %38 : vector<1x512xf32> to vector<1x1x512xf32>
    %cst_21 = arith.constant dense<0.000000e+00> : vector<1xf32>
    %40 = vector.multi_reduction <add>, %39, %cst_21 [1, 2] : vector<1x1x512xf32> to vector<1xf32>
    %41 = vector.shape_cast %40 : vector<1xf32> to vector<1x1x1xf32>
    %42 = vector.extract %41[0, 0, 0] : f32 from vector<1x1x1xf32>
    %43 = vector.broadcast %42 : f32 to vector<1x128xf32>
    %44 = arith.addf %34, %43 : vector<1x128xf32>
    %c0_22 = arith.constant 0 : index
    %c0_23 = arith.constant 0 : index
    %45 = vector.load %arg8[%c0_22, %c0_23] : memref<1x128xf32, #tpu.memory_space<vmem>>, vector<1x128xf32>
    tpu.vector_store %arg8[%c0_22, %c0_23], %44 {strides = array<i32>} : memref<1x128xf32, #tpu.memory_space<vmem>>, vector<1x128xf32>,
    %c0_i32_24 = arith.constant 0 : i32
    %46 = arith.cmpi eq, %arg1, %c0_i32_24 : i32
    %47 = arith.extui %46 : i1 to i32
    %c0_i32_25 = arith.constant 0 : i32
    %48 = arith.cmpi ne, %47, %c0_i32_25 : i32
    scf.if %48 {
      %c0_26 = arith.constant 0 : index
      %c0_27 = arith.constant 0 : index
      %49 = vector.load %arg7[%c0_26, %c0_27] : memref<1x128xf32, #tpu.memory_space<vmem>>, vector<1x128xf32>
      %50 = vector.shape_cast %49 : vector<1x128xf32> to vector<1x1x128xf32>
      %c0_28 = arith.constant 0 : index
      %c0_29 = arith.constant 0 : index
      %c0_30 = arith.constant 0 : index
      %51 = vector.load %arg5[%c0_28, %c0_29, %c0_30] : memref<1x1x128xf32, #tpu.memory_space<vmem>>, vector<1x1x128xf32>
      tpu.vector_store %arg5[%c0_28, %c0_29, %c0_30], %50 {strides = array<i32>} : memref<1x1x128xf32, #tpu.memory_space<vmem>>, vector<1x1x128xf32>,
      %c0_31 = arith.constant 0 : index
      %c0_32 = arith.constant 0 : index
      %52 = vector.load %arg8[%c0_31, %c0_32] : memref<1x128xf32, #tpu.memory_space<vmem>>, vector<1x128xf32>
      %53 = vector.shape_cast %52 : vector<1x128xf32> to vector<1x1x128xf32>
      %c0_33 = arith.constant 0 : index
      %c0_34 = arith.constant 0 : index
      %c0_35 = arith.constant 0 : index
      %54 = vector.load %arg6[%c0_33, %c0_34, %c0_35] : memref<1x1x128xf32, #tpu.memory_space<vmem>>, vector<1x1x128xf32>
      tpu.vector_store %arg6[%c0_33, %c0_34, %c0_35], %53 {strides = array<i32>} : memref<1x1x128xf32, #tpu.memory_space<vmem>>, vector<1x1x128xf32>,
    } else {
    }
    return
  }
  func.func @transform_0(%arg0: i32, %arg1: i32) -> (i32, i32, i32) {
    %c0_i32 = arith.constant 0 : i32
    %c0_i32_0 = arith.constant 0 : i32
    return %arg0, %c0_i32, %arg1 : i32, i32, i32
  }
  func.func @transform_1(%arg0: i32, %arg1: i32) -> (i32, i32, i32) {
    %c0_i32 = arith.constant 0 : i32
    %c0_i32_0 = arith.constant 0 : i32
    return %arg0, %c0_i32, %arg1 : i32, i32, i32
  }
  func.func @transform_2(%arg0: i32, %arg1: i32) -> (i32, i32, i32) {
    %c0_i32 = arith.constant 0 : i32
    %c0_i32_0 = arith.constant 0 : i32
    return %arg0, %c0_i32, %arg1 : i32, i32, i32
  }
  func.func @transform_3(%arg0: i32, %arg1: i32) -> (i32, i32, i32) {
    %c0_i32 = arith.constant 0 : i32
    %c0_i32_0 = arith.constant 0 : i32
    %c0_i32_1 = arith.constant 0 : i32
    return %arg0, %c0_i32, %c0_i32_0 : i32, i32, i32
  }
  func.func @transform_4(%arg0: i32, %arg1: i32) -> (i32, i32, i32) {
    %c0_i32 = arith.constant 0 : i32
    %c0_i32_0 = arith.constant 0 : i32
    %c0_i32_1 = arith.constant 0 : i32
    return %arg0, %c0_i32, %c0_i32_0 : i32, i32, i32
  }
}

</mosaic_0001>

<bundles_post_ra>
// kernel: tpu_custom_call.1
= control target key start
LH: loop header
LB: loop body
LE: loop exit
PB: predicated region body
PF: predicated region fallthrough
CT: control target
= control target key end

     0   :  { %s1441_s0 = inlined_call_operand.hbm [shape: f32[2,4,512], index: 0, kind: input, shape index: {}]   ;;  %s1442_s1 = inlined_call_operand.hbm [shape: f32[2,4,512], index: 1, kind: input, shape index: {}]   ;;  %s1443_s2 = inlined_call_operand.hbm [shape: f32[2,1,512], index: 2, kind: input, shape index: {}]   ;;  %s1444_s3 = inlined_call_operand.hbm [shape: f32[2,1,128], index: 3, kind: output, shape index: {0}]   ;;  %s1445_s4 = inlined_call_operand.hbm [shape: f32[2,1,128], index: 4, kind: output, shape index: {1}]  }
   0x1   :  { %1455 = sst [smem:[#allocation21_spill]] %s1441_s0 }
   0x2   :  { %1456 = sst [smem:[#allocation22_spill]] %s1442_s1 }
   0x3   :  { %10 = vsyncpa [#allocation5], 0 }
   0x4   :  { %12 = vsyncpa [#allocation5 + $0x1], 0 }
   0x5   :  { %13 = vsyncpa [#allocation8], 0 }
   0x6   :  { %15 = vsyncpa [#allocation8 + $0x1], 0 }
   0x7   :  { %16 = vsyncpa [#allocation6], 0 }
   0x8   :  { %18 = vsyncpa [#allocation6 + $0x1], 0 }
   0x9   :  { %19 = vsyncpa [#allocation12], 0 }
   0xa   :  { %21 = vsyncpa [#allocation12 + $0x1], 0  ;;  %s1128_s15 = smov 0   ;;  %s1130_s16 = smov 0  }
   0xb   :  { %s1132_s17 = smov 0   ;;  %s1134_s18 = smov 0  }
   0xc   :  { %s1136_s19 = smov 0   ;;  %s1138_s20 = smov 0  }
   0xd LB: > { %1457 = sst [smem:[#allocation17_spill]] %s1082_s17  ;;  %s1159_s21 = sadd.s32 4294967295, %s1094_s20   ;;  %s1094_s20 = sphi %s1138_s20, %s27_s20   ;;  %s1090_s19 = sphi %s1136_s19, %s1488_s19   ;;  %s1086_s18 = sphi %s1134_s18, %s1487_s18   ;;  %s1082_s17 = sphi %s1132_s17, %s1483_s17   ;;  %s1078_s16 = sphi %s1130_s16, %s1486_s16   ;;  %s1074_s15 = sphi %s1128_s15, %s1485_s15  }
   0xe   : > { %1458 = sst [smem:[#allocation18_spill]] %s1094_s20  ;;  %s771_s22 = sadd.s32 4294967294, %s1094_s20  }
   0xf   : > { %s39_s23 = sadd.s32 1, %s1090_s19  ;;  %s48_s24 = sadd.s32 1, %s1082_s17 }
  0x10   : > { %p41_p0 = scmp.ge.s32.totalorder %s39_s23, 2  ;;  %p55_p1 = scmp.ne.s32.totalorder %s1082_s17, %s1078_s16 }
  0x11   : > { %p56_p2 = scmp.eq.s32.totalorder %s1094_s20, 0  ;;  %p61_p3 = scmp.ne.s32.totalorder %s1078_s16, %s1074_s15 }
  0x12   : > { %s1490_s23 = smov (%p41_p0, %s39_s23), 0  ;;  %p62_p5 = scmp.eq.s32.totalorder %s1159_s21, 0 }
  0x13   : > { %1459 = sst [smem:[#allocation19_spill]] %s1490_s23  ;;  %p1171_p4 = por %p56_p2, %p55_p1 }
  0x14   : > { %s43_s26 = ssub.s32 %s1090_s19, %s1490_s23  ;;  %p141_p6 = scmp.eq.s32.totalorder %s1159_s21, 1 }
  0x15   : > { %p46_p7 = scmp.eq.s32.totalorder %s43_s26, 0  ;;  %p1179_p8 = por %p62_p5, %p61_p3 }
  0x16   : > { %p1183_p9 = por %p141_p6, %p55_p1  ;;  %p147_p10 = scmp.eq.s32.totalorder %s771_s22, 1 }
  0x17   : > { %s1461_s27 = scalar_select %p1179_p8, 1, 0 }
  0x18   : > { %s1462_s28 = scalar_select %p1183_p9, 1, 0 }
  0x19   : > { %s1188_s29 = scalar_select %p46_p7, %s1082_s17, %s48_s24  }
  0x1a   : > { %p1190_p11 = por %p147_p10, %p61_p3  ;;  %p826_p13 = scmp.lt.s32.totalorder %s1094_s20, 2 }
  0x1b   : > { %1463 = sst [smem:[#allocation20_spill]] %s1188_s29  ;;  %s1197_s5 = sand.u32 1, %s1082_s17  }
  0x1c   : > { %s1464_s30 = scalar_select %p1190_p11, 1, 0 }
  0x1d   : > { %s1446_s6 = sshll.u32 %s1197_s5, 4  ;;  %s792_s7 = sshll.u32 %s1090_s19, 8 }
  0x1e   : > { %p1203_p0 = pnand %p826_p13, %p1171_p4  ;;  %s214_s9 = sand.u32 1, %s1094_s20  }
  0x1f   : > { %s1466_s1 = sld [smem:[#allocation22_spill]]  ;;  %s218_s13 = scalar_lea.vmem [#allocation7], %s1446_s6 }
  0x20   : > { %s1465_s8 = scalar_select %p1203_p0, 1, 0 }
  0x21   : > { %s228_s14 = sshll.u32 %s218_s13, 4  ;;  %s1221_s22 = scalar_lea.sflag [#allocation8], %s214_s9  ;;  %s1218_s14 = int_to_ptr.vmem [resolvable:$true] %s228_s14 }
  0x22   : > { %p1227_p4 = pneg %p1203_p0 }
  0x25   : > { %s1213_s12 = scalar_lea.hbm %s1466_s1, %s792_s7  ;;  %s891_s11 = scalar_lea.hbm %s1466_s1, 512 }
  0x26   : > { %s886_s24 = scalar_lea.hbm %s1213_s12, 256  ;;  %p892_p7 = scmp.lt.u32.totalorder %s1213_s12, %s1466_s1 }
  0x27   : > { %p887_p3 = scmp.ne.s32.totalorder %s1213_s12, %s886_s24  ;;  %p893_p10 = scmp.lt.u32.totalorder %s891_s11, %s886_s24 }
  0x28   : > { %p895_p12 = scmp.lt.u32.totalorder %s886_s24, %s1213_s12 }
  0x29   : > { %p889_p5 = pnand %p1227_p4, %p887_p3  ;;  %p894_p13 = por %p893_p10, %p892_p7 }
  0x2b   : > { %p890_p6 = pneg %p889_p5  ;;  %p896_p1 = por %p895_p12, %p894_p13 }
  0x2d   : > { %p897_p2 = pnand %p896_p1, %p890_p6 }
  0x2f   : > { %900 = shalt.err (!%p897_p2)
}
  0x30   : > { %s901_s9 = scalar_lea.vmem %s1218_s14, 256  ;;  %s1096_s26 = smov [#allocation7]  }
  0x31   : > { %p902_p3 = scmp.ne.s32.totalorder %s1218_s14, %s901_s9  ;;  %s906_s10 = sshll.u32 %s1096_s26, 4  ;;  %s907_s10 = int_to_ptr.vmem [resolvable:$false] %s906_s10 }
  0x32   : > { %s908_s6 = scalar_lea.vmem %s907_s10, 512  ;;  %p909_p9 = scmp.lt.s32.totalorder %s1218_s14, %s907_s10 }
  0x33   : > { %p904_p5 = pnand %p902_p3, %p1227_p4  ;;  %p910_p8 = scmp.lt.s32.totalorder %s908_s6, %s901_s9 }
  0x35   : > { %p905_p11 = pneg %p904_p5  ;;  %p911_p7 = por %p910_p8, %p909_p9 }
  0x37   : > { %p912_p10 = pnand %p911_p7, %p905_p11 }
  0x39   : > { %915 = shalt.err (!%p912_p10)
}
  0x3a   : > { %815 = dma.hbm_to_vmem [thread:$0]  (!%p1203_p0), %s1213_s12, 256, %s1218_s14, %s1221_s22  }
  0x3b   : > { %p1468_p12 = scmp.lt.s32.totalorder %s1094_s20, 3  ;;  %p1469_p1 = scmp.ge.s32.totalorder %s1094_s20, 1 }
  0x3c   : > { %s1471_s0 = sld [smem:[#allocation21_spill]]  ;;  %s1472_s26 = sshll.u32 %s1197_s5, 4 }
  0x3d   : > { %p1255_p2 = pnand %p1469_p1, %p1468_p12  ;;  %s197_s10 = scalar_lea.vmem [#allocation4], %s1472_s26 }
  0x3e   : > { %s207_s6 = sshll.u32 %s197_s10, 4  ;;  %s194_s14 = scalar_lea.sflag [#allocation5], %s1197_s5  ;;  %s208_s6 = int_to_ptr.vmem [resolvable:$true] %s207_s6 }
  0x3f   : > { %s1470_s24 = scalar_select %p1255_p2, 1, 0 }
  0x42   : > { %s1264_s9 = scalar_lea.hbm %s1471_s0, %s792_s7  ;;  %s921_s7 = scalar_lea.hbm %s1471_s0, 512 }
  0x43   : > { %s916_s1 = scalar_lea.hbm %s1264_s9, 256  ;;  %p922_p6 = scmp.lt.u32.totalorder %s1264_s9, %s1471_s0 }
  0x44   : > { %p917_p8 = scmp.ne.s32.totalorder %s1264_s9, %s916_s1  ;;  %p923_p13 = scmp.lt.u32.totalorder %s921_s7, %s916_s1 }
  0x45   : > { %p925_p5 = scmp.lt.u32.totalorder %s916_s1, %s1264_s9 }
  0x46   : > { %p919_p9 = pnand %p917_p8, %p1227_p4  ;;  %p924_p3 = por %p923_p13, %p922_p6 }
  0x48   : > { %p920_p11 = pneg %p919_p9  ;;  %p926_p7 = por %p925_p5, %p924_p3 }
  0x4a   : > { %p927_p10 = pnand %p926_p7, %p920_p11 }
  0x4c   : > { %930 = shalt.err (!%p927_p10)
}
  0x4d   : > { %s931_s26 = scalar_lea.vmem %s208_s6, 256  ;;  %s1097_s10 = smov [#allocation4]  }
  0x4e   : > { %p932_p12 = scmp.ne.s32.totalorder %s208_s6, %s931_s26  ;;  %s936_s12 = sshll.u32 %s1097_s10, 4  ;;  %s937_s12 = int_to_ptr.vmem [resolvable:$false] %s936_s12 }
  0x4f   : > { %s938_s23 = scalar_lea.vmem %s937_s12, 512  ;;  %p939_p9 = scmp.lt.s32.totalorder %s208_s6, %s937_s12 }
  0x50   : > { %p934_p1 = pnand %p932_p12, %p1227_p4  ;;  %p940_p2 = scmp.lt.s32.totalorder %s938_s23, %s931_s26 }
  0x52   : > { %p935_p8 = pneg %p934_p1  ;;  %p941_p0 = por %p940_p2, %p939_p9 }
  0x54   : > { %p942_p6 = pnand %p941_p0, %p935_p8 }
  0x56   : > { %945 = shalt.err (!%p942_p6)
}
  0x57   : > { %p1473_p13 = scmp.ne.s32.totalorder %s1465_s8, 0  ;;  %s794_s1 = sshll.u32 %s1090_s19, 6 }
  0x58   : > { %s1474_s29 = sshll.u32 %s1197_s5, 2  ;;  %s247_s0 = scalar_lea.hbm %s1443_s2, %s794_s1 }
  0x59   : > { %812 = dma.hbm_to_vmem [thread:$0]  (!%p1473_p13), %s1264_s9, 256, %s208_s6, %s194_s14  }
  0x5a   : > { %s239_s7 = scalar_lea.vmem [#allocation9], %s1474_s29  ;;  %s946_s12 = scalar_lea.hbm %s247_s0, 64 }
  0x5b   : > { %s249_s11 = sshll.u32 %s239_s7, 4  ;;  %p947_p2 = scmp.ne.s32.totalorder %s247_s0, %s946_s12  ;;  %s250_s11 = int_to_ptr.vmem [resolvable:$true] %s249_s11 }
  0x5c   : > { %s951_s17 = scalar_lea.hbm %s1443_s2, 128  ;;  %p952_p3 = scmp.lt.u32.totalorder %s247_s0, %s1443_s2 }
  0x5d   : > { %p949_p0 = pnand %p947_p2, %p1227_p4  ;;  %p953_p5 = scmp.lt.u32.totalorder %s951_s17, %s946_s12 }
  0x5e   : > { %p955_p10 = scmp.lt.u32.totalorder %s946_s12, %s247_s0 }
  0x5f   : > { %p950_p11 = pneg %p949_p0  ;;  %p954_p7 = por %p953_p5, %p952_p3 }
  0x61   : > { %p956_p12 = por %p955_p10, %p954_p7 }
  0x63   : > { %p957_p1 = pnand %p956_p12, %p950_p11 }
  0x65   : > { %960 = shalt.err (!%p957_p1)
}
  0x66   : > { %s961_s5 = scalar_lea.vmem %s250_s11, 64  ;;  %s1098_s6 = smov [#allocation9]  }
  0x67   : > { %p962_p8 = scmp.ne.s32.totalorder %s250_s11, %s961_s5  ;;  %s966_s14 = sshll.u32 %s1098_s6, 4  ;;  %s967_s14 = int_to_ptr.vmem [resolvable:$false] %s966_s14 }
  0x68   : > { %s968_s1 = scalar_lea.vmem %s967_s14, 128  ;;  %p969_p2 = scmp.lt.s32.totalorder %s250_s11, %s967_s14 }
  0x69   : > { %p964_p9 = pnand %p962_p8, %p1227_p4  ;;  %p970_p0 = scmp.lt.s32.totalorder %s968_s1, %s961_s5 }
  0x6b   : > { %p965_p6 = pneg %p964_p9  ;;  %p971_p13 = por %p970_p0, %p969_p2 }
  0x6d   : > { %p972_p3 = pnand %p971_p13, %p965_p6 }
  0x6f   : > { %975 = shalt.err (!%p972_p3)
}
  0x70   : > { %p1475_p5 = scmp.ne.s32.totalorder %s1465_s8, 0  ;;  %p1476_p11 = scmp.ne.s32.totalorder %s1470_s24, 0 }
  0x71   : > { %s1309_s17 = sand.u32 (!%p1476_p11), 1, %s1078_s16   ;;  %p1477_p4 = scmp.ne.s32.totalorder (!%p1476_p11), %s1461_s27, 0 }
  0x72   : > { %818 = dma.hbm_to_vmem [thread:$0]  (!%p1475_p5), %s247_s0, 64, %s250_s11, %s1221_s22  }
  0x73   : > { %258 = sbr.rel (%p1476_p11) target bundleno = 441 (0x1b9), region = 32  ;;  %s784_s20 = sshll.u32 (!%p1476_p11), %s1309_s17, 4 }
  0x74   : > { %s261_s25 = scalar_lea.sflag (!%p1476_p11), [#allocation5], %s1309_s17  ;;  %s264_s29 = scalar_lea.vmem (!%p1476_p11), [#allocation4], %s784_s20 }
  0x7a   : > { %1057 = dma.done.wait (%p1477_p4), %s261_s25, 256  }
  0x7b   : > { %1059 = vsyncadd (%p1477_p4), %s261_s25, 4294967040  ;;  %s269_s0 = sand.u32 1, %s1159_s21   ;;  %s273_s22 = scalar_lea.vmem [#allocation7], %s784_s20 }
  0x7c   : > { %s270_s8 = scalar_lea.sflag [#allocation8], %s269_s0 }
  0x7d   : > { %1061 = dma.done.wait (%p1477_p4), %s270_s8, 320  }
  0x7e   : > { %1063 = vsyncadd (%p1477_p4), %s270_s8, 4294966976  ;;  %v1099_v0 = vmov 0.0   ;;  %v329_v1 = vld [vmem:[%s264_s29] sm:$0xff]  ;;  %v330_v2 = vld [vmem:[%s264_s29 + $0x8] sm:$0xff]  ;;  %vm342_vm0 = vcmask 1043456   ;;  %s786_s21 = sshll.u32 %s1309_s17, 2 }
  0x7f   : > { %327 = vst [vmem:[#allocation2] sm:$0x1] %v1099_v0  ;;  %328 = vst [vmem:[#allocation3] sm:$0x1] %v1099_v0  ;;  %v371_v3 = vmul.f32 %v329_v1, %v329_v1  ;;  %v372_v4 = vmul.f32 %v330_v2, %v330_v2  ;;  %v331_v12 = vld [vmem:[%s273_s22] sm:$0xff]  ;;  %v332_v17 = vld [vmem:[%s273_s22 + $0x8] sm:$0xff] }
  0x80   : > { %v334_v14 = vmul.f32 %v331_v12, %v329_v1  ;;  %v335_v21 = vmul.f32 %v332_v17, %v330_v2  ;;  %v407_v22 = vmul.f32 %v331_v12, %v331_v12  ;;  %v408_v26 = vmul.f32 %v332_v17, %v332_v17  ;;  %s282_s27 = scalar_lea.vmem [#allocation9], %s786_s21  ;;  %s788_s11 = sshll.u32 %s1086_s18, 4 }
  0x81   : > { %v375_v5 = vcombine.high %v371_v3, %v371_v3  ;;  %v379_v6 = vsel %vm342_vm0, %v371_v3, 0.0  ;;  %v376_v7 = vcombine.high %v372_v4, %v372_v4  ;;  %v393_v11 = vsel %vm342_vm0, %v372_v4, 0.0  ;;  %s313_s13 = scalar_lea.vmem [#allocation10], %s1309_s17  ;;  %s1353_s23 = scalar_lea.hbm %s1444_s3, %s788_s11 }
  0x82   : > { %v380_v8 = vrot.slane %v379_v6, 4  ;;  %v394_v13 = vrot.slane %v393_v11, 4  ;;  %v338_v23 = vcombine.high %v334_v14, %v334_v14  ;;  %v343_v28 = vsel %vm342_vm0, %v334_v14, 0.0  ;;  %s603_s10 = sshll.u32 %s313_s13, 4  ;;  %s319_s9 = scalar_lea.vmem [#allocation11], %s1309_s17  ;;  %s1355_s10 = int_to_ptr.vmem [resolvable:$true] %s603_s10 }
  0x83   : > { %v386_v9 = vsel %vm342_vm0, %v375_v5, 0.0  ;;  %v400_v16 = vsel %vm342_vm0, %v376_v7, 0.0  ;;  %v339_v30 = vcombine.high %v335_v21, %v335_v21  ;;  %v357_v31 = vsel %vm342_vm0, %v335_v21, 0.0  ;;  %s1360_s5 = sshll.u32 %s319_s9, 4  ;;  %s587_s6 = scalar_lea.sflag [#allocation6], %s1309_s17  ;;  %s1392_s5 = int_to_ptr.vmem [resolvable:$true] %s1360_s5 }
  0x84   : > { %v387_v10 = vrot.slane %v386_v9, 4  ;;  %v381_v15 = vadd.f32 %v380_v8, %v379_v6  ;;  %v395_v19 = vadd.f32 %v394_v13, %v393_v11  ;;  %v401_v20 = vrot.slane %v400_v16, 4  ;;  %s976_s14 = scalar_lea.vmem %s1355_s10, 16  ;;  %p1478_p7 = scmp.ne.s32.totalorder %s1462_s28, 0 }
  0x85   : > { %v411_v33 = vcombine.high %v407_v22, %v407_v22  ;;  %v350_v34 = vsel %vm342_vm0, %v338_v23, 0.0  ;;  %v412_v36 = vcombine.high %v408_v26, %v408_v26  ;;  %v415_v37 = vsel %vm342_vm0, %v407_v22, 0.0  ;;  %p977_p13 = scmp.ne.s32.totalorder %s1355_s10, %s976_s14  ;;  %s1101_s1 = smov [#allocation10]  }
  0x86   : > { %v388_v18 = vadd.f32 %v387_v10, %v386_v9  ;;  %v382_v24 = vrot.slane %v381_v15, 2  ;;  %v402_v25 = vadd.f32 %v401_v20, %v400_v16  ;;  %v396_v29 = vrot.slane %v395_v19, 2  ;;  %s980_s20 = sshll.u32 %s1101_s1, 4  ;;  %s981_s20 = int_to_ptr.vmem [resolvable:$false] %s980_s20 }
  0x87   : > { %v416_v39 = vrot.slane %v415_v37, 4  ;;  %v422_v40 = vsel %vm342_vm0, %v411_v33, 0.0  ;;  %v429_v41 = vsel %vm342_vm0, %v408_v26, 0.0  ;;  %v436_v45 = vsel %vm342_vm0, %v412_v36, 0.0  ;;  %p978_p10 = pnand %p977_p13, %p1478_p7  ;;  %s982_s25 = scalar_lea.vmem %s981_s20, 32 }
  0x88   : > { %v389_v27 = vrot.slane %v388_v18, 2  ;;  %v403_v32 = vrot.slane %v402_v25, 2  ;;  %v383_v35 = vadd.f32 %v382_v24, %v381_v15  ;;  %v397_v42 = vadd.f32 %v396_v29, %v395_v19  ;;  %p983_p1 = scmp.lt.s32.totalorder %s1355_s10, %s981_s20  ;;  %p984_p8 = scmp.lt.s32.totalorder %s982_s25, %s976_s14 }
  0x89   : > { %v423_v43 = vrot.slane %v422_v40, 4  ;;  %v430_v44 = vrot.slane %v429_v41, 4  ;;  %v344_v46 = vrot.slane %v343_v28, 4  ;;  %v417_v48 = vadd.f32 %v416_v39, %v415_v37  ;;  %p979_p12 = pneg %p978_p10 }
  0x8a   : > { %v390_v38 = vadd.f32 %v389_v27, %v388_v18  ;;  %v404_v47 = vadd.f32 %v403_v32, %v402_v25  ;;  %v437_v49 = vrot.slane %v436_v45, 4  ;;  %v358_v50 = vrot.slane %v357_v31, 4  ;;  %p985_p9 = por %p984_p8, %p983_p1 }
  0x8b   : > { %v364_v51 = vsel %vm342_vm0, %v339_v30, 0.0  ;;  %v424_v52 = vadd.f32 %v423_v43, %v422_v40  ;;  %v431_v53 = vadd.f32 %v430_v44, %v429_v41  ;;  %v351_v54 = vrot.slane %v350_v34, 4 }
  0x8c   : > { %v384_v55 = vrot.slane %v383_v35, 1  ;;  %v418_v56 = vrot.slane %v417_v48, 2  ;;  %v438_v57 = vadd.f32 %v437_v49, %v436_v45  ;;  %v391_v58 = vrot.slane %v390_v38, 1  ;;  %p986_p6 = pnand %p985_p9, %p979_p12 }
  0x8d   : > { %v398_v59 = vrot.slane %v397_v42, 1  ;;  %v425_v60 = vrot.slane %v424_v52, 2  ;;  %v432_v61 = vrot.slane %v431_v53, 2  ;;  %v365_v62 = vrot.slane %v364_v51, 4 }
  0x8e   : > { %v405_v63 = vrot.slane %v404_v47, 1  ;;  %v419_v1 = vadd.f32 %v418_v56, %v417_v48  ;;  %v439_v2 = vrot.slane %v438_v57, 2  ;;  %v345_v3 = vadd.f32 %v344_v46, %v343_v28 }
  0x8f   : > { %v359_v4 = vadd.f32 %v358_v50, %v357_v31  ;;  %v426_v5 = vadd.f32 %v425_v60, %v424_v52  ;;  %v433_v6 = vadd.f32 %v432_v61, %v431_v53  ;;  %v352_v7 = vadd.f32 %v351_v54, %v350_v34 }
  0x90   : > { %v385_v8 = vadd.f32 %v384_v55, %v383_v35  ;;  %v420_v9 = vrot.slane %v419_v1, 1  ;;  %v440_v10 = vadd.f32 %v439_v2, %v438_v57  ;;  %v392_v11 = vadd.f32 %v391_v58, %v390_v38 }
  0x91   : > { %v399_v12 = vadd.f32 %v398_v59, %v397_v42  ;;  %v427_v13 = vrot.slane %v426_v5, 1  ;;  %v434_v14 = vrot.slane %v433_v6, 1  ;;  %v366_v15 = vadd.f32 %v365_v62, %v364_v51  ;;  %v333_v62 = vld [vmem:[%s282_s27] sm:$0xf] }
  0x92   : > { %v406_v16 = vadd.f32 %v405_v63, %v404_v47  ;;  %v421_v17 = vadd.f32 %v420_v9, %v419_v1  ;;  %v441_v18 = vrot.slane %v440_v10, 1  ;;  %v346_v19 = vrot.slane %v345_v3, 2 }
  0x93   : > { %v428_v20 = vadd.f32 %v427_v13, %v426_v5  ;;  %v435_v21 = vadd.f32 %v434_v14, %v433_v6  ;;  %v353_v22 = vrot.slane %v352_v7, 2  ;;  %v360_v25 = vrot.slane %v359_v4, 2 }
  0x94   : > { %v442_v23 = vadd.f32 %v441_v18, %v440_v10  ;;  %v443_v24 = vmul.f32 %v421_v17, %v385_v8  ;;  %v367_v28 = vrot.slane %v366_v15, 2  ;;  %v347_v31 = vadd.f32 %v346_v19, %v345_v3 }
  0x95   : > { %v444_v26 = vmul.f32 %v428_v20, %v392_v11  ;;  %v445_v27 = vmul.f32 %v435_v21, %v399_v12  ;;  %v354_v34 = vadd.f32 %v353_v22, %v352_v7  ;;  %v361_v36 = vadd.f32 %v360_v25, %v359_v4 }
  0x96   : > { %v446_v29 = vmul.f32 %v442_v23, %v406_v16  ;;  %v447_v30 = vmax.f32 %v443_v24, 1e-16  ;;  %v368_v37 = vadd.f32 %v367_v28, %v366_v15  ;;  %v348_v38 = vrot.slane %v347_v31, 1 }
  0x97   : > { %v448_v32 = vmax.f32 %v444_v26, 1e-16  ;;  %v449_v33 = vmax.f32 %v445_v27, 1e-16  ;;  %v355_v39 = vrot.slane %v354_v34, 1  ;;  %v362_v40 = vrot.slane %v361_v36, 1 }
  0x98   : > { %v450_v35 = vmax.f32 %v446_v29, 1e-16  ;;  %878 = vrsqrt.f32 %v447_v30  ;;  %v369_v41 = vrot.slane %v368_v37, 1  ;;  %v1100_v42 = vmov 1966171168  }
  0x99   : > { %880 = vrsqrt.f32 %v448_v32  ;;  %v470_v43 = vunpack.c.l.s4 %v1100_v42  ;;  %v472_v44 = vlaneseq  ;;  %v349_v45 = vadd.f32 %v348_v38, %v347_v31 }
  0x9a   : > { %882 = vrsqrt.f32 %v449_v33  ;;  %v356_v46 = vadd.f32 %v355_v39, %v354_v34  ;;  %v363_v47 = vadd.f32 %v362_v40, %v361_v36  ;;  %v370_v49 = vadd.f32 %v369_v41, %v368_v37 }
  0x9b   : > { %884 = vrsqrt.f32 %v450_v35  ;;  %v471_v50 = vunpack.c.0.s8 %v470_v43  ;;  %v473_v51 = vshrl.u32 %v472_v44, 7  ;;  %vm536_vm1 = vcmp.eq.f32.partialorder %v333_v62, 1.0 }
  0x9c   : > { %v787_v5 = vsel %vm536_vm1, 1.0, %v1099_v0  ;;  %vm515_vm2 = vcmask 1040384  }
  0x9d   : > { %v474_v61 = vsub.s32 %v471_v50, %v473_v51  ;;  %v497_v7 = vsub.s32 0, %v473_v51  ;;  %v501_v8 = vsub.s32 1, %v473_v51  ;;  %v505_v13 = vsub.s32 2, %v473_v51 }
  0x9e   : > { %v509_v14 = vsub.s32 3, %v473_v51 }
  0x9f   : > { %v543_v10 = vrot.slane %v787_v5, %v497_v7  ;;  %v547_v11 = vrot.slane %v787_v5, %v501_v8  ;;  %v551_v16 = vrot.slane %v787_v5, %v505_v13 }
  0xa0   : > { %v555_v22 = vrot.slane %v787_v5, %v509_v14 }
  0xa1   : > { %v560_v17 = vsel %vm515_vm2, %v543_v10, 0.0  ;;  %v561_v18 = vsel %vm515_vm2, %v547_v11, 0.0  ;;  %v563_v27 = vsel %vm515_vm2, %v551_v16, 0.0 }
  0xa2   : > { %v879_v48 = vpop.eup %878  ;;  %v562_v23 = vadd.f32 %v561_v18, %v560_v17  ;;  %v565_v32 = vsel %vm515_vm2, %v555_v22, 0.0 }
  0xa3   : > { %v881_v52 = vpop.eup %880  ;;  %v455_v53 = vmul.f32 %v879_v48, %v349_v45 }
  0xa4   : > { %v883_v54 = vpop.eup %882  ;;  %v456_v55 = vmul.f32 %v881_v52, %v356_v46  ;;  %v564_v31 = vadd.f32 %v563_v27, %v562_v23  ;;  %v535_v52 = vld [vmem:[#allocation3] sm:$0x1] }
  0xa5   : > { %v885_v56 = vpop.eup %884  ;;  %v457_v57 = vmul.f32 %v883_v54, %v363_v47  ;;  %v459_v58 = vsub.f32 1.0, %v455_v53 }
  0xa6   : > { %v458_v59 = vmul.f32 %v885_v56, %v370_v49  ;;  %v460_v60 = vsub.f32 1.0, %v456_v55  ;;  %v566_v34 = vadd.f32 %v565_v32, %v564_v31  ;;  %v493_v49 = vld [vmem:[#allocation2] sm:$0x1] }
  0xa7   : > { %v461_v63 = vsub.f32 1.0, %v457_v57 }
  0xa8   : > { %v462_v1 = vsub.f32 1.0, %v458_v59  ;;  %v467_v2 = vcombine.low %v459_v58, %v460_v60 }
  0xaa   : > { %v468_v3 = vcombine.low %v461_v63, %v462_v1  ;;  %v475_v4 = vrot.slane %v467_v2, %v474_v61 }
  0xac   : > { %v482_v6 = vrot.slane %v468_v3, %v474_v61 }
  0xae   : > { %v483_v9 = vcombine.low %v475_v4, %v482_v6 }
  0xb0   : > { %v490_v12 = vrot.slane %v483_v9, %v474_v61 }
  0xb2   : > { %v492_v15 = vmul.f32 %v490_v12, %v333_v62 }
  0xb4   : > { %v498_v19 = vrot.slane %v492_v15, %v497_v7  ;;  %v502_v20 = vrot.slane %v492_v15, %v501_v8  ;;  %v506_v21 = vrot.slane %v492_v15, %v505_v13  ;;  %v510_v0 = vrot.slane %v492_v15, %v509_v14 }
  0xb6   : > { %v516_v24 = vsel %vm515_vm2, %v498_v19, 0.0  ;;  %v517_v25 = vsel %vm515_vm2, %v502_v20, 0.0  ;;  %v519_v26 = vsel %vm515_vm2, %v506_v21, 0.0  ;;  %v521_v29 = vsel %vm515_vm2, %v510_v0, 0.0 }
  0xb7   : > { %v518_v28 = vadd.f32 %v517_v25, %v516_v24 }
  0xb9   : > { %v520_v30 = vadd.f32 %v519_v26, %v518_v28 }
  0xbb   : > { %v522_v33 = vadd.f32 %v521_v29, %v520_v30 }
  0xbd   : > { %523 = vadd.xlane.f32.xlu0 %v522_v33 }
  0xc1   : > { %567 = vadd.xlane.f32.xlu0 %v566_v34 }
 0x14a   : > { %v524_v35 = vpop.xlane.xlu0 %523 }
 0x14b   : > { %v525_v36 = vrot.slane %v524_v35, 4 }
 0x14d   : > { %v526_v37 = vadd.f32 %v525_v36, %v524_v35 }
 0x14e   : > { %v568_v38 = vpop.xlane.xlu0 %567 }
 0x14f   : > { %v527_v39 = vrot.slane %v526_v37, 2  ;;  %v569_v40 = vrot.slane %v568_v38, 4 }
 0x151   : > { %v570_v41 = vadd.f32 %v569_v40, %v568_v38  ;;  %v528_v42 = vadd.f32 %v527_v39, %v526_v37 }
 0x153   : > { %v571_v43 = vrot.slane %v570_v41, 2  ;;  %v529_v44 = vrot.slane %v528_v42, 1 }
 0x155   : > { %v572_v45 = vadd.f32 %v571_v43, %v570_v41  ;;  %v530_v46 = vadd.f32 %v529_v44, %v528_v42 }
 0x157   : > { %795 = vpush %v530_v46  ;;  %v573_v47 = vrot.slane %v572_v45, 1 }
 0x159   : > { %v574_v48 = vadd.f32 %v573_v47, %v572_v45 }
 0x15b   : > { %797 = vpush %v574_v48 }
 0x188   : > { %s796_s24 = spop %795 }
 0x189   : > { %v532_v50 = vstv %s796_s24 }
 0x18a   : > { %v533_v51 = vadd.f32 %v532_v50, %v493_v49 }
 0x18c   : > { %534 = vst [vmem:[#allocation2] sm:$0x1] %v533_v51  ;;  %s798_s7 = spop %797 }
 0x18d   : > { %v576_v53 = vstv %s798_s7 }
 0x18e   : > { %v577_v54 = vadd.f32 %v576_v53, %v535_v52 }
 0x190   : > { %578 = vst [vmem:[#allocation3] sm:$0x1] %v577_v54 }
 0x193   : > { %v582_v55 = vld [vmem:[#allocation2] sm:$0x1] }
 0x194   : > { %583 = vst [vmem:[%s313_s13] sm:$0x1] %v582_v55 }
 0x195   : > { %989 = shalt.err (!%p986_p6)
}
 0x196   : > { %s990_s29 = scalar_lea.hbm %s1353_s23, 16  ;;  %s994_s22 = scalar_lea.hbm %s1444_s3, 32 }
 0x197   : > { %p991_p2 = scmp.ne.s32.totalorder %s1353_s23, %s990_s29  ;;  %p995_p5 = scmp.lt.u32.totalorder %s1353_s23, %s1444_s3 }
 0x198   : > { %p996_p11 = scmp.lt.u32.totalorder %s994_s22, %s990_s29  ;;  %p998_p13 = scmp.lt.u32.totalorder %s990_s29, %s1353_s23 }
 0x199   : > { %p992_p0 = pnand %p991_p2, %p1478_p7 }
 0x19a   : > { %p997_p4 = por %p996_p11, %p995_p5 }
 0x19b   : > { %p993_p3 = pneg %p992_p0 }
 0x19c   : > { %p999_p10 = por %p998_p13, %p997_p4 }
 0x19e   : > { %p1000_p12 = pnand %p999_p10, %p993_p3 }
 0x1a0   : > { %1003 = shalt.err (!%p1000_p12)
}
 0x1a1   : > { %805 = dma.vmem_to_hbm [thread:$0]  (%p1478_p7), %s1355_s10, 16, %s1353_s23, %s587_s6   ;;  %v584_v56 = vld [vmem:[#allocation3] sm:$0x1] }
 0x1a2   : > { %s1389_s13 = scalar_lea.hbm %s1445_s4, %s788_s11  ;;  %585 = vst [vmem:[%s319_s9] sm:$0x1] %v584_v56  ;;  %s591_s12 = scalar_lea.sflag [#allocation12], %s1309_s17 }
 0x1a3   : > { %s1004_s26 = scalar_lea.vmem %s1392_s5, 16  ;;  %s1102_s18 = smov [#allocation11]  }
 0x1a4   : > { %p1005_p1 = scmp.ne.s32.totalorder %s1392_s5, %s1004_s26  ;;  %s1008_s10 = sshll.u32 %s1102_s18, 4  ;;  %s1009_s10 = int_to_ptr.vmem [resolvable:$false] %s1008_s10 }
 0x1a5   : > { %s1010_s23 = scalar_lea.vmem %s1009_s10, 32  ;;  %p1011_p6 = scmp.lt.s32.totalorder %s1392_s5, %s1009_s10 }
 0x1a6   : > { %p1006_p8 = pnand %p1005_p1, %p1478_p7  ;;  %p1012_p2 = scmp.lt.s32.totalorder %s1010_s23, %s1004_s26 }
 0x1a8   : > { %p1007_p9 = pneg %p1006_p8  ;;  %p1013_p0 = por %p1012_p2, %p1011_p6 }
 0x1aa   : > { %p1014_p3 = pnand %p1013_p0, %p1007_p9 }
 0x1ac   : > { %1017 = shalt.err (!%p1014_p3)
}
 0x1ad   : > { %s1018_s17 = scalar_lea.hbm %s1389_s13, 16  ;;  %s1022_s6 = scalar_lea.hbm %s1445_s4, 32 }
 0x1ae   : > { %p1019_p5 = scmp.ne.s32.totalorder %s1389_s13, %s1018_s17  ;;  %p1023_p13 = scmp.lt.u32.totalorder %s1389_s13, %s1445_s4 }
 0x1af   : > { %p1024_p10 = scmp.lt.u32.totalorder %s1022_s6, %s1018_s17  ;;  %p1026_p1 = scmp.lt.u32.totalorder %s1018_s17, %s1389_s13 }
 0x1b0   : > { %p1020_p11 = pnand %p1019_p5, %p1478_p7 }
 0x1b1   : > { %p1025_p12 = por %p1024_p10, %p1023_p13 }
 0x1b2   : > { %p1021_p4 = pneg %p1020_p11 }
 0x1b3   : > { %p1027_p8 = por %p1026_p1, %p1025_p12 }
 0x1b5   : > { %p1028_p9 = pnand %p1027_p8, %p1021_p4 }
 0x1b7   : > { %1031 = shalt.err (!%p1028_p9)
}
 0x1b8   : > { %806 = dma.vmem_to_hbm [thread:$0]  (%p1478_p7), %s1392_s5, 16, %s1389_s13, %s591_s12  }
 0x1b9 PF: > { %s1479_s20 = sld [smem:[#allocation18_spill]]  ;;  %s628_s25 = sand.u32 1, %s1074_s15  }
 0x1ba   : > { %p1480_p6 = scmp.ne.s32.totalorder %s1464_s30, 0  ;;  %s629_s29 = scalar_lea.sflag [#allocation6], %s628_s25 }
 0x1bf   : > { %p1481_p2 = scmp.ge.s32.totalorder %s1479_s20, 2 }
 0x1c1   : > { %p820_p0 = pnand %p1481_p2, %p1480_p6 }
 0x1c3   : > { %1065 = dma.done.wait (!%p820_p0), %s629_s29, 16  }
 0x1c4   : > { %1067 = vsyncadd (!%p820_p0), %s629_s29, 4294967280  ;;  %s637_s0 = scalar_lea.sflag [#allocation12], %s628_s25 }
 0x1c5   : > { %1069 = dma.done.wait (!%p820_p0), %s637_s0, 16  }
 0x1c6   : > { %1071 = vsyncadd (!%p820_p0), %s637_s0, 4294967280  ;;  %s27_s20 = sadd.s32 1, %s1479_s20   ;;  %s1482_s28 = sld [smem:[#allocation17_spill]] }
 0x1c7   : > { %p24_p3 = scmp.ge.s32.totalorder %s27_s20, 4   ;;  %s1483_s17 = sld [smem:[#allocation20_spill]] }
 0x1c8   : > { %s1484_s5 = sld [smem:[#allocation19_spill]]  ;;  %s1485_s15 = smov %s1078_s16 }
 0x1c9   : > { %s1487_s18 = smov %s1090_s19  ;;  %26 = sbr.rel (!%p24_p3) target bundleno = 13 (0xd), region = 126 }
 0x1cc   : > { %s1486_s16 = smov %s1482_s28 }
 0x1ce   : > { %s1488_s19 = smov %s1484_s5 }
 0x1d0   :  { %641 = vsyncpa [#allocation5], 1 }
 0x1d1   :  { %643 = vsyncpa [#allocation5 + $0x1], 1 }
 0x1d2   :  { %644 = vsyncpa [#allocation8], 1 }
 0x1d3   :  { %646 = vsyncpa [#allocation8 + $0x1], 1 }
 0x1d4   :  { %647 = vsyncpa [#allocation6], 1 }
 0x1d5   :  { %649 = vsyncpa [#allocation6 + $0x1], 1 }
 0x1d6   :  { %650 = vsyncpa [#allocation12], 1 }
 0x1d7   :  { %652 = vsyncpa [#allocation12 + $0x1], 1 }

</bundles_post_ra>
